<compile_context>
chip_gen: v5e
topology: v5e:2x2
jax: 0.10.0
libtpu: 0.0.40
codegen_flags: <defaults>
</compile_context>

<pallas_src>
import numpy as np
import jax
import jax.numpy as jnp
from jax.experimental import pallas as pl
from jax.experimental.pallas import tpu as pltpu


# -----------------------------------------------------------------------------
# Small helpers
# -----------------------------------------------------------------------------
def _round_up(x, m):
    return ((x + m - 1) // m) * m


_VMEM_LIMIT_CACHE = None


def _vmem_limit():
    """Scoped-VMEM limit for the Pallas calls, derived from the chip
    (v5e/v6e: 128 MiB physical -> 64 MiB; v7x: 64 MiB physical -> 32 MiB)."""
    global _VMEM_LIMIT_CACHE
    if _VMEM_LIMIT_CACHE is None:
        try:
            cap = pltpu.get_tpu_info().vmem_capacity_bytes
            _VMEM_LIMIT_CACHE = int(min(cap // 2, 64 * 1024 * 1024))
        except Exception:
            _VMEM_LIMIT_CACHE = 32 * 1024 * 1024
    return _VMEM_LIMIT_CACHE


class _PaddedA:
    """(n, d) matrix padded once to a lane-dense (n, d_pad) layout plus its
    per-column squared norms; reused across all kernel calls for this matrix."""

    def __init__(self, A):
        self.A = jnp.asarray(A, jnp.float32)
        self.n, self.d = self.A.shape
        # VMEM-budget-aware lane tile: double-buffered f32 A tile <= ~8 MiB.
        a_tile_budget = min(8 << 20, _vmem_limit() // 4)
        td_cap = max(128, (a_tile_budget // (8 * max(self.n, 1))) // 128 * 128)
        d128 = _round_up(self.d, 128)
        self.td = int(min(td_cap, d128))
        self.d_pad = _round_up(self.d, self.td)
        pad = self.d_pad - self.d
        self.A_pad = jnp.pad(self.A, ((0, 0), (0, pad))) if pad else self.A
        # Per-column squared norms (precomputed once; removes the in-kernel
        # E*E pass) and the total ||A||_F^2 used by the swap objective.
        self.colsq = jnp.sum(self.A_pad * self.A_pad, axis=0, keepdims=True)
        self.total_sq = jnp.sum(self.colsq)


def _orth_basis_qt(M):
    """Q^T (c_pad, n) with Q an orthonormal basis of range(M), zero columns for
    (near-)null directions, so Q @ Q^T == M @ pinv(M) == M @ pinv(M^T M) @ M^T."""
    n, c = M.shape
    if c == 0:
        return jnp.zeros((8, n), jnp.float32)
    M = M.astype(jnp.float32)
    # TODO(synk): SVD (pinverse equivalent) stays in XLA glue; no Pallas SVD.
    U, s, _ = jnp.linalg.svd(M, full_matrices=False)
    tol = jnp.max(s) * max(n, c) * jnp.finfo(jnp.float32).eps
    Q = U * (s > tol).astype(jnp.float32)[None, :]
    r0 = Q.shape[1]
    r_pad = _round_up(r0, 8)
    if r_pad != r0:
        Q = jnp.pad(Q, ((0, 0), (0, r_pad - r0)))
    return Q.T                                             # (r_pad, n)


# -----------------------------------------------------------------------------
# Pallas kernels
# -----------------------------------------------------------------------------
def _residual_cn_kernel(qt_ref, a_ref, csq_ref, cn_ref):
    """Per-column squared residual norms for one lane tile of A:
       cn_j = ||a_j||^2 - ||Q^T a_j||^2  (orthogonal-projector identity).
       One MXU matmul; no E materialized, no (n, td) elementwise pass."""
    qta = jnp.dot(qt_ref[...], a_ref[...],
                  preferred_element_type=jnp.float32)       # (c_pad, td)
    proj = jnp.sum(qta * qta, axis=0, keepdims=True)        # (1, td) tiny reduce
    cn_ref[...] = jnp.maximum(csq_ref[...] - proj, 0.0)


def pallas_residual_colnorms(pa, QT):
    """Column-wise squared norms (d,) of A - Q Q^T A, tiled over the lane axis."""
    n, d_pad, td = pa.n, pa.d_pad, pa.td
    r_pad = QT.shape[0]
    cn = pl.pallas_call(
        _residual_cn_kernel,
        out_shape=jax.ShapeDtypeStruct((1, d_pad), jnp.float32),
        grid=(d_pad // td,),
        in_specs=[
            pl.BlockSpec((r_pad, n), lambda j: (0, 0)),     # Q^T resident
            pl.BlockSpec((n, td), lambda j: (0, j)),        # A lane tile
            pl.BlockSpec((1, td), lambda j: (0, j)),        # precomputed ||a_j||^2
        ],
        out_specs=pl.BlockSpec((1, td), lambda j: (0, j)),
        compiler_params=pltpu.CompilerParams(
            dimension_semantics=("parallel",),
            vmem_limit_bytes=_vmem_limit()),
    )(QT, pa.A_pad, pa.colsq)
    return cn[0, :pa.d]


def _make_batched_obj_kernel(td):
    n_chunks = td // 128

    def kernel(qt_ref, a_ref, out_ref):
        """One candidate-block x one A lane tile: accumulate lane-partial
        sums of (Q_stack^T A)^2 into a lane-dense (rows_block, 128) output."""
        @pl.when(pl.program_id(1) == 0)
        def _():
            out_ref[...] = jnp.zeros_like(out_ref)
        qta = jnp.dot(qt_ref[...], a_ref[...],
                      preferred_element_type=jnp.float32)   # (rows_block, td)
        sq = qta * qta
        acc = sq[:, 0:128]
        for c in range(1, n_chunks):                        # static 128-lane chunks
            acc = acc + sq[:, c * 128:(c + 1) * 128]
        out_ref[...] += acc

    return kernel


def batched_projection_objectives(pa, cand_idx, valid):
    """||A - cols_i @ pinv(cols_i) @ A||_F for every candidate column set
    (cand_idx rows; duplicate indices allowed -- they don't change the span),
    evaluated with candidates stacked into ~256-row MXU blocks."""
    n, d_pad, td = pa.n, pa.d_pad, pa.td
    num_cand, c = cand_idx.shape

    # Gather candidate column sets and build orthonormal bases on device.
    A_cand = jnp.take(pa.A, cand_idx, axis=1)               # (n, num_cand, c)
    A_cand = jnp.moveaxis(A_cand, 1, 0)                     # (num_cand, n, c)
    # TODO(synk): batched SVD (pinverse equivalent) stays in XLA glue.
    U, s, _ = jnp.linalg.svd(A_cand, full_matrices=False)   # (nc, n, r0), (nc, r0)
    tol = jnp.max(s, axis=-1, keepdims=True) * max(n, c) * jnp.finfo(jnp.float32).eps
    Q = U * (s > tol).astype(jnp.float32)[..., None, :]     # (nc, n, r0)
    r0 = Q.shape[-1]
    c_pad = _round_up(r0, 8)
    if c_pad != r0:
        Q = jnp.pad(Q, ((0, 0), (0, 0), (0, c_pad - r0)))

    # Stack candidates so each MXU LHS block has ~256 rows.
    cpb = max(1, 256 // c_pad)                               # candidates per block
    rows_block = cpb * c_pad
    num_cand_pad = _round_up(num_cand, cpb)
    QT = jnp.swapaxes(Q, 1, 2)                               # (nc, c_pad, n)
    if num_cand_pad != num_cand:
        QT = jnp.pad(QT, ((0, num_cand_pad - num_cand), (0, 0), (0, 0)))
    QT_stack = QT.reshape(num_cand_pad * c_pad, n)
    num_blocks = num_cand_pad // cpb

    out = pl.pallas_call(
        _make_batched_obj_kernel(td),
        out_shape=jax.ShapeDtypeStruct((num_cand_pad * c_pad, 128), jnp.float32),
        grid=(num_blocks, d_pad // td),
        in_specs=[
            pl.BlockSpec((rows_block, n), lambda i, j: (i, 0)),   # stacked Q^T
            pl.BlockSpec((n, td), lambda i, j: (0, j)),           # A lane tile
        ],
        out_specs=pl.BlockSpec((rows_block, 128), lambda i, j: (i, 0)),
        compiler_params=pltpu.CompilerParams(
            dimension_semantics=("parallel", "arbitrary"),
            vmem_limit_bytes=_vmem_limit()),
    )(QT_stack, pa.A_pad)

    proj_sq = out.reshape(num_cand_pad, c_pad * 128).sum(axis=1)[:num_cand]
    obj_sq = jnp.maximum(pa.total_sq - proj_sq, 0.0)
    obj_sq = jnp.where(valid, obj_sq, jnp.inf)               # reference skips empty sets
    return jnp.sqrt(obj_sq)                                  # (num_cand,)


def _mlp_kernel(x_ref, w1_ref, b1_ref, w2_ref, b2_ref, w3_ref, b3_ref, o_ref):
    """Fused classifier: Linear+ReLU -> (Dropout=identity) -> Linear+ReLU -> Linear.
    bf16 MXU inputs, f32 accumulation and biases."""
    x = x_ref[...]
    h1 = jnp.dot(x, w1_ref[...], preferred_element_type=jnp.float32) + b1_ref[...]
    h1 = jnp.maximum(h1, 0.0).astype(jnp.bfloat16)
    # TODO(synk): nn.Dropout(0.2) is implemented as identity (eval-mode forward).
    h2 = jnp.dot(h1, w2_ref[...], preferred_element_type=jnp.float32) + b2_ref[...]
    h2 = jnp.maximum(h2, 0.0).astype(jnp.bfloat16)
    o_ref[...] = jnp.dot(h2, w3_ref[...], preferred_element_type=jnp.float32) + b3_ref[...]


def pallas_mlp(x, w1, b1, w2, b2, w3, b3, num_classes):
    m, kin = x.shape
    h1 = w1.shape[1]
    h2 = w2.shape[1]
    out_pad = w3.shape[1]
    # Row tile up to 512 (pad rows and slice after); tiny m runs as one block.
    tm = min(512, _round_up(m, 8))
    m_pad = _round_up(m, tm)
    xq = x.astype(jnp.bfloat16)
    if m_pad != m:
        xq = jnp.pad(xq, ((0, m_pad - m), (0, 0)))
    out = pl.pallas_call(
        _mlp_kernel,
        out_shape=jax.ShapeDtypeStruct((m_pad, out_pad), jnp.float32),
        grid=(m_pad // tm,),
        in_specs=[
            pl.BlockSpec((tm, kin), lambda i: (i, 0)),
            pl.BlockSpec((kin, h1), lambda i: (0, 0)),
            pl.BlockSpec((1, h1), lambda i: (0, 0)),
            pl.BlockSpec((h1, h2), lambda i: (0, 0)),
            pl.BlockSpec((1, h2), lambda i: (0, 0)),
            pl.BlockSpec((h2, out_pad), lambda i: (0, 0)),
            pl.BlockSpec((1, out_pad), lambda i: (0, 0)),
        ],
        out_specs=pl.BlockSpec((tm, out_pad), lambda i: (i, 0)),
        compiler_params=pltpu.CompilerParams(
            dimension_semantics=("parallel",),
            vmem_limit_bytes=_vmem_limit()),
    )(xq, w1, b1, w2, b2, w3, b3)
    return out[:m, :num_classes]


# -----------------------------------------------------------------------------
# RNG helper (deterministic, replaces torch.rand / torch.multinomial)
# -----------------------------------------------------------------------------
class RNG:
    def __init__(self, key):
        self.key = key

    def _next(self):
        self.key, sub = jax.random.split(self.key)
        return sub

    def uniform(self, shape):
        return jax.random.uniform(self._next(), shape, dtype=jnp.float32)

    def categorical(self, logits):
        return jax.random.categorical(self._next(), logits)


# -----------------------------------------------------------------------------
# ContinuousLS (column swap step)
# -----------------------------------------------------------------------------
def continuous_ls(pa, k, S, temperature, rng):
    n, d = pa.n, pa.d

    # E = A' - S @ pinv(S^T S) @ S^T @ A'  ==  A' - Q Q^T A'   (same projector).
    QT = _orth_basis_qt(S)
    col_norms = pallas_residual_colnorms(pa, QT)
    col_norms_sum = jnp.sum(col_norms) + 1e-10
    probs = col_norms / col_norms_sum

    num_samples = min(10 * k, d)
    u = rng.uniform((d,))
    gumbel = -jnp.log(-jnp.log(u + 1e-10) + 1e-10)
    logits = jnp.log(probs + 1e-10) + gumbel
    _, C_indices = jax.lax.top_k(logits, num_samples)
    C_idx_np = np.asarray(C_indices)

    p_soft = jax.nn.softmax(jnp.ones((num_samples,), jnp.float32) / temperature)

    # Reconstruct I_soft from S via the reference's column-norm matching test.
    I_soft = np.zeros(d, dtype=np.float32)
    if S.shape[1] > 0:
        S_norms = jnp.linalg.norm(S.astype(jnp.float32), axis=0)       # (c,)
        A_col_norms = jnp.sqrt(pa.colsq[0, :d])                        # (d,)
        match = jnp.abs(S_norms[None, :] - A_col_norms[:, None]) / (
            A_col_norms[:, None] + 1e-10) < 1e-5
        I_soft = np.array(jnp.any(match, axis=1).astype(jnp.float32))  # writable copy

    active = np.where(I_soft > 0.5)[0]
    min_idx = -1
    if len(active) > 0:
        na = len(active)
        ns = num_samples
        active_j = jnp.asarray(active.astype(np.int32))                 # (na,)
        C_j = C_indices.astype(jnp.int32)                               # (ns,)
        # Candidate (p, q) grid (p-major / q-minor matches the reference loop
        # order, so argmin tie-breaking matches).  Each candidate column set is
        # `active` with the q-position replaced:
        #   p not in active      -> replace q with p        (== active\{q} ∪ {p})
        #   p == active[q]       -> replace with a duplicate (== active\{p})
        p_mat = jnp.broadcast_to(C_j[:, None], (ns, na))
        dup = active_j[(np.arange(na) + 1) % na]
        repl = jnp.where(p_mat == active_j[None, :], dup[None, :], p_mat)
        eye = jnp.eye(na, dtype=bool)
        cand_idx = jnp.where(eye[None, :, :], repl[:, :, None],
                             jnp.broadcast_to(active_j[None, None, :], (ns, na, na)))
        cand_idx = cand_idx.reshape(ns * na, na)
        if na == 1:
            # p == q with a single active column leaves an empty set: the
            # reference skips that candidate entirely.
            valid = p_mat.reshape(-1) != active_j[0]
        else:
            valid = jnp.ones((ns * na,), dtype=bool)

        if bool(jnp.any(valid)):
            objs = batched_projection_objectives(pa, cand_idx, valid)
            best = int(jnp.argmin(objs))                                 # one readback
            cand_q = np.broadcast_to(active[None, :], (ns, na)).reshape(-1)
            min_idx = int(cand_q[best])

    if min_idx != -1:
        I_soft[min_idx] = 0.0
        choice = int(np.asarray(rng.categorical(jnp.log(p_soft + 1e-30))))
        best_p_idx = int(C_idx_np[choice])
        I_soft[best_p_idx] = 1.0

    selected = np.where(I_soft > 0.5)[0]
    return pa.A[:, selected]


# -----------------------------------------------------------------------------
# ContinuousLSCSS
# -----------------------------------------------------------------------------
def continuous_lscss(A, k, T, temperature, rng):
    A = jnp.asarray(A, jnp.float32)
    n, d = A.shape
    I_soft = np.zeros(d, dtype=np.float32)
    B = A
    D = None
    pa = _PaddedA(A)          # padded/cast once per matrix version (hoisted)
    last_cn = None

    for t in range(T):
        for _ in range(k):
            active = np.where(I_soft > 0.5)[0]
            A_I = pa.A[:, active]
            QT = _orth_basis_qt(A_I)            # empty selection -> zero basis -> E = A
            col_norms = pallas_residual_colnorms(pa, QT)
            last_cn = col_norms
            col_norms_sum = jnp.sum(col_norms) + 1e-10
            prob = col_norms / col_norms_sum
            u = rng.uniform((d,))
            gumbel = -jnp.log(-jnp.log(u + 1e-10) + 1e-10)
            logits = jnp.log(prob + 1e-10) + gumbel
            soft_i = jax.nn.softmax(logits / temperature)
            I_soft = I_soft + np.asarray(soft_i) * (1.0 - I_soft)
            # NOTE: the reference's `A_i`, `proj_update`, and trailing `E` are
            # dead code (overwritten before any use) and are skipped here.

        if t == 0:
            # norm_factor uses the same A_I / residual as the last inner
            # iteration -> reuse its column norms instead of recomputing.
            norm_factor = jnp.sqrt(jnp.sum(last_cn))
            diag_val = norm_factor / ((52 * min(n, d) * (k + 1)) ** 1.5 + 1e-10)
            idx = jnp.arange(min(n, d))
            D = jnp.zeros((n, d), jnp.float32).at[idx, idx].set(diag_val)
            pa = _PaddedA(pa.A + D)             # re-pad once for the perturbed A
            I_soft = np.zeros(d, dtype=np.float32)

    # A_prime = B + D when D exists; pa.A already holds exactly that matrix.
    A_prime = pa.A if D is not None else B
    if D is None:
        pa = _PaddedA(B)

    active = np.where(I_soft > 0.5)[0]
    S = A_prime[:, active]
    for _ in range(T):
        S = continuous_ls(pa, k, S, temperature, rng)

    I_final = np.where(I_soft > 0.5)[0][:k]
    if len(I_final) < k:
        remaining = np.argsort(-I_soft, kind="stable")
        remaining = remaining[~np.isin(remaining, I_final)]
        I_final = np.concatenate([I_final, remaining[: k - len(I_final)]])
    I_final = I_final.astype(np.int32)
    return A_prime[:, I_final], jnp.asarray(I_final)


# -----------------------------------------------------------------------------
# Full network
# -----------------------------------------------------------------------------
def _init_linear(key, fan_in, fan_out):
    # PyTorch nn.Linear default init: U(-1/sqrt(fan_in), 1/sqrt(fan_in))
    kw, kb = jax.random.split(key)
    bound = 1.0 / float(np.sqrt(fan_in))
    w = jax.random.uniform(kw, (fan_in, fan_out), jnp.float32, -bound, bound)
    b = jax.random.uniform(kb, (1, fan_out), jnp.float32, -bound, bound)
    return w, b


class ContinuousColumnSelectionNet:
    def __init__(self, n_features, num_classes, k=10, T=2, temperature=1.0,
                 key=jax.random.PRNGKey(42)):
        self.n_features = n_features
        self.num_classes = num_classes
        self.k = k
        self.T = T
        self.temperature = temperature
        k1, k2, k3 = jax.random.split(key, 3)
        self.w1, self.b1 = _init_linear(k1, k, 128)
        self.w2, self.b2 = _init_linear(k2, 128, 64)
        self.w3, self.b3 = _init_linear(k3, 64, num_classes)

        # Pre-pad (hidden 64 -> 128 lanes, head -> 128-lane multiple) and
        # pre-cast weights to bf16 once (hoisted out of the forward path).
        h2_pad = 128
        self.out_pad = _round_up(max(num_classes, 1), 128)
        w2p = jnp.pad(self.w2, ((0, 0), (0, h2_pad - self.w2.shape[1])))
        b2p = jnp.pad(self.b2, ((0, 0), (0, h2_pad - self.b2.shape[1])))
        w3p = jnp.pad(self.w3, ((0, h2_pad - self.w3.shape[0]),
                                (0, self.out_pad - self.w3.shape[1])))
        b3p = jnp.pad(self.b3, ((0, 0), (0, self.out_pad - self.b3.shape[1])))
        self.w1_q = self.w1.astype(jnp.bfloat16)
        self.w2_q = w2p.astype(jnp.bfloat16)
        self.w3_q = w3p.astype(jnp.bfloat16)
        self.b1_f = self.b1
        self.b2_f = b2p
        self.b3_f = b3p

    def __call__(self, X, rng):
        selected_features, selected_indices = continuous_lscss(
            X, self.k, self.T, self.temperature, rng)
        output = pallas_mlp(selected_features,
                            self.w1_q, self.b1_f, self.w2_q, self.b2_f,
                            self.w3_q, self.b3_f, self.num_classes)
        return output, selected_features, selected_indices


# -----------------------------------------------------------------------------
# Main
# -----------------------------------------------------------------------------
if __name__ == "__main__":
    key = jax.random.PRNGKey(0)
    k_x, k_params, k_rng = jax.random.split(key, 3)

    n_samples, n_features = 16, 32
    num_classes = 3
    k_sel, T = 4, 2

    X = jax.random.normal(k_x, (n_samples, n_features), dtype=jnp.float32)

    net = ContinuousColumnSelectionNet(
        n_features=n_features, num_classes=num_classes,
        k=k_sel, T=T, temperature=1.0, key=k_params)

    rng = RNG(k_rng)
    output, selected_features, selected_indices = net(X, rng)

    jax.block_until_ready(output)
    jax.block_until_ready(selected_features)

    assert output.shape == (n_samples, num_classes)
    assert selected_features.shape == (n_samples, k_sel)
    assert selected_indices.shape == (k_sel,)
    print("KERNEL_OK")
</pallas_src>

<mosaic_0001>
module attributes {stable_mosaic.version = 11 : i64} {
  func.func @_residual_cn_kernel(%arg0: i32, %arg1: memref<8x16xf32, #tpu.memory_space<vmem>>, %arg2: memref<16x128xf32, #tpu.memory_space<vmem>>, %arg3: memref<1x128xf32, #tpu.memory_space<vmem>>, %arg4: memref<1x128xf32, #tpu.memory_space<vmem>>) attributes {dimension_semantics = [#tpu.dimension_semantics<parallel>], iteration_bounds = array<i64: 1>, scalar_prefetch = 0 : i64, scratch_operands = 0 : i64, tpu.core_type = #tpu.core_type<tc>, window_params = [{pipeline_mode = #tpu.pipeline_mode<synchronous>, transform_indices = @transform_0, window_bounds = array<i64: 8, 16>}, {transform_indices = @transform_1, window_bounds = array<i64: 16, 128>}, {transform_indices = @transform_2, window_bounds = array<i64: 1, 128>}, {transform_indices = @transform_3, window_bounds = array<i64: 1, 128>}]} {
    %c0 = arith.constant 0 : index
    %c0_0 = arith.constant 0 : index
    %0 = vector.load %arg1[%c0, %c0_0] : memref<8x16xf32, #tpu.memory_space<vmem>>, vector<8x16xf32>
    %c0_1 = arith.constant 0 : index
    %c0_2 = arith.constant 0 : index
    %1 = vector.load %arg2[%c0_1, %c0_2] : memref<16x128xf32, #tpu.memory_space<vmem>>, vector<16x128xf32>
    %cst = arith.constant dense<0.000000e+00> : vector<8x128xf32>
    %2 = tpu.matmul %0, %1, %cst {dimension_numbers = #tpu.dot_dimension_numbers<[1], [0], [0], [1], [0, 0, 1, 1], [], []>} : vector<8x16xf32>, vector<16x128xf32>, vector<8x128xf32> -> vector<8x128xf32>
    %3 = arith.mulf %2, %2 : vector<8x128xf32>
    %cst_3 = arith.constant dense<0.000000e+00> : vector<128xf32>
    %4 = vector.multi_reduction <add>, %3, %cst_3 [0] : vector<8x128xf32> to vector<128xf32>
    %5 = vector.shape_cast %4 : vector<128xf32> to vector<1x128xf32>
    %c0_4 = arith.constant 0 : index
    %c0_5 = arith.constant 0 : index
    %6 = vector.load %arg3[%c0_4, %c0_5] : memref<1x128xf32, #tpu.memory_space<vmem>>, vector<1x128xf32>
    %7 = arith.subf %6, %5 : vector<1x128xf32>
    %cst_6 = arith.constant 0.000000e+00 : f32
    %8 = vector.broadcast %cst_6 : f32 to vector<1x128xf32>
    %9 = arith.maximumf %7, %8 : vector<1x128xf32>
    %c0_7 = arith.constant 0 : index
    %c0_8 = arith.constant 0 : index
    %10 = vector.load %arg4[%c0_7, %c0_8] : memref<1x128xf32, #tpu.memory_space<vmem>>, vector<1x128xf32>
    tpu.vector_store %arg4[%c0_7, %c0_8], %9 {strides = array<i32>} : memref<1x128xf32, #tpu.memory_space<vmem>>, vector<1x128xf32>,
    return
  }
  func.func @transform_0(%arg0: i32) -> (i32, i32) {
    %c0_i32 = arith.constant 0 : i32
    %c0_i32_0 = arith.constant 0 : i32
    %c0_i32_1 = arith.constant 0 : i32
    return %c0_i32, %c0_i32_0 : i32, i32
  }
  func.func @transform_1(%arg0: i32) -> (i32, i32) {
    %c0_i32 = arith.constant 0 : i32
    %c0_i32_0 = arith.constant 0 : i32
    return %c0_i32, %arg0 : i32, i32
  }
  func.func @transform_2(%arg0: i32) -> (i32, i32) {
    %c0_i32 = arith.constant 0 : i32
    %c0_i32_0 = arith.constant 0 : i32
    return %c0_i32, %arg0 : i32, i32
  }
  func.func @transform_3(%arg0: i32) -> (i32, i32) {
    %c0_i32 = arith.constant 0 : i32
    %c0_i32_0 = arith.constant 0 : i32
    return %c0_i32, %arg0 : i32, i32
  }
}

</mosaic_0001>

<bundles_post_ra>
// kernel: tpu_custom_call.1
= control target key start
LH: loop header
LB: loop body
LE: loop exit
PB: predicated region body
PF: predicated region fallthrough
CT: control target
= control target key end

     0   :  { %8 = vsyncpa [#allocation3], 0  ;;  %s222_s0 = inlined_call_operand.hbm [shape: f32[8,16], index: 0, kind: input, shape index: {}]   ;;  %s223_s1 = inlined_call_operand.hbm [shape: f32[16,128], index: 1, kind: input, shape index: {}]   ;;  %s224_s2 = inlined_call_operand.vmem [shape: f32[1,128], index: 2, kind: input, shape index: {}]   ;;  %s225_s3 = inlined_call_operand.hbm [shape: f32[1,128], index: 3, kind: output, shape index: {}]  }
   0x1   :  { %9 = vsyncpa [#allocation6], 0 }
   0x2   :  { %10 = vsyncpa [#allocation4], 0  ;;  %s16_s14 = sshll.u32 %s222_s0, 4  ;;  %s185_s15 = smov [#allocation2]   ;;  %s17_s14 = int_to_ptr.hbm [resolvable:$true] %s16_s14 }
   0x3   :  { %s18_s16 = sshll.u32 %s185_s15, 4  ;;  %s26_s19 = sshll.u32 %s223_s1, 4  ;;  %s19_s16 = int_to_ptr.vmem [resolvable:$true] %s18_s16  ;;  %s27_s19 = int_to_ptr.hbm [resolvable:$true] %s26_s19 }
   0x4   :  { %21 = dma.hbm_to_vmem [thread:$0]  %s17_s14, 128, %s19_s16, [#allocation3]  }
   0x5   :  { %s186_s20 = smov [#allocation5]   ;;  %s187_s22 = smov 128  }
   0x6   :  { %s28_s21 = sshll.u32 %s186_s20, 4  ;;  %s188_s23 = smov 8   ;;  %s29_s21 = int_to_ptr.vmem [resolvable:$true] %s28_s21 }
   0x7   :  { %34 = dma.hbm_to_vmem [thread:$0]  %s27_s19, 256, %s29_s21, [#allocation6], %s187_s22, %s187_s22, %s188_s23  }
   0x8   :  { %179 = dma.done.wait [#allocation3], 128  }
   0x9   :  { %180 = vsyncadd [#allocation3], 4294967168 }
   0xa   :  { %181 = dma.done.wait [#allocation6], 256  }
   0xb   :  { %182 = vsyncadd [#allocation6], 4294967040  ;;  %v47_v0 = vld [vmem:[#allocation5 + $0x8] sm:$0xff]  ;;  %v46_v1 = vld [vmem:[#allocation5] sm:$0xff]  ;;  %vm48_vm0 = vcmask 130048   ;;  %s189_s24 = smov [#allocation7]  }
   0xc   :  { %66 = vmatpush.msra.mxu0 %v47_v0  ;;  %v45_v2 = vld [vmem:[#allocation2] sm:$0xff]  ;;  %s88_s25 = sshll.u32 %s189_s24, 4  ;;  %s90_s28 = sshll.u32 %s225_s3, 4  ;;  %s89_s25 = int_to_ptr.vmem [resolvable:$true] %s88_s25  ;;  %s91_s28 = int_to_ptr.hbm [resolvable:$true] %s90_s28 }
   0xd   :  { %v79_v10 = vld [vmem:[%s224_s2] sm:$0x1] }
   0xe   :  { %67 = vmatpush.msra.mxu0 %v46_v1 }
   0xf   :  { %101 = vmatmul.msk.f32.vlgmr.msra.gmra.mxu0 %vm48_vm0, %v45_v2 }
  0x8c   :  { %v69_v3 = vpop.f32.mrf.mxu0 }
  0x8d   :  { %v72_v4 = vmul.f32 %v69_v3, %v69_v3 }
  0x8f   :  { %v73_v5 = vrot.slane %v72_v4, 4 }
  0x91   :  { %v74_v6 = vadd.f32 %v73_v5, %v72_v4 }
  0x93   :  { %v75_v7 = vrot.slane %v74_v6, 2 }
  0x95   :  { %v76_v8 = vadd.f32 %v75_v7, %v74_v6 }
  0x97   :  { %v77_v9 = vrot.slane %v76_v8, 1 }
  0x99   :  { %v78_v11 = vadd.f32 %v77_v9, %v76_v8 }
  0x9b   :  { %v80_v12 = vsub.f32 %v79_v10, %v78_v11 }
  0x9d   :  { %v81_v13 = vmax.f32 %v80_v12, 0.0 }
  0x9f   :  { %82 = vst [vmem:[#allocation7] sm:$0x1] %v81_v13 }
  0xa0   :  { %93 = dma.vmem_to_hbm [thread:$0]  %s89_s25, 16, %s91_s28, [#allocation4]  }
  0xa1   :  { %183 = dma.done.wait [#allocation4], 16  }
  0xa2   :  { %184 = vsyncadd [#allocation4], 4294967280 }
  0xa3   :  { %98 = vsyncpa [#allocation3], 1 }
  0xa4   :  { %99 = vsyncpa [#allocation6], 1 }
  0xa5   :  { %100 = vsyncpa [#allocation4], 1 }

</bundles_post_ra>
